<compile_context>
chip_gen: v7x
topology: tpu7x:2x2x1
jax: 0.10.0
libtpu: 0.0.40
codegen_flags: <defaults>
</compile_context>

<pallas_src>
import functools
import math

import jax
import jax.numpy as jnp
from jax.experimental import pallas as pl
from jax.experimental.pallas import tpu as pltpu

LEAKY_SLOPE = 0.2
COMPUTE_DTYPE = jnp.bfloat16       # MXU inputs / inter-layer activations (f32 accum)


def _round_up(v, m):
    return (v + m - 1) // m * m


# ----------------------------------------------------------------------------
# Generation-aware VMEM budgets (v5e/v6e: 128 MiB, v7x: 64 MiB per TensorCore).
# ----------------------------------------------------------------------------
def _vmem_capacity_bytes():
    try:
        info = pltpu.get_tpu_info()
        for attr in ("vmem_capacity_bytes", "vmem_size_bytes"):
            cap = getattr(info, attr, None)
            if cap:
                return int(cap)
    except Exception:
        pass
    return 64 * 1024 * 1024        # conservative default (v7x per-core)


_VMEM_CAP = _vmem_capacity_bytes()
_VMEM_LIMIT = min((_VMEM_CAP * 3) // 4, 96 * 1024 * 1024)
_DIRECT_CONV_BUDGET = _VMEM_LIMIT // 3


# ----------------------------------------------------------------------------
# Tiled matmul + bias + leaky-ReLU (MXU), K-reduction accumulator in VMEM.
# ----------------------------------------------------------------------------
def _matmul_bias_act_kernel(x_ref, w_ref, b_ref, o_ref, acc_ref, *, slope):
    @pl.when(pl.program_id(2) == 0)
    def _():
        acc_ref[...] = jnp.zeros_like(acc_ref)

    acc_ref[...] += jnp.dot(x_ref[...], w_ref[...],
                            preferred_element_type=jnp.float32)

    @pl.when(pl.program_id(2) == pl.num_programs(2) - 1)
    def _():
        acc = acc_ref[...] + b_ref[...]                  # epilogue stays f32
        if slope is not None:
            acc = jnp.maximum(acc, slope * acc)          # leaky ReLU, slope in (0,1)
        o_ref[...] = acc.astype(o_ref.dtype)


def _pick_m_tile(m, tm_max):
    """tm dividing m (no HBM pad of activations) when possible -> (tm, m_padded)."""
    if m <= tm_max:
        return m, m                                      # full-extent block allowed
    cap = tm_max - tm_max % 8
    for cand in range(cap, 7, -8):
        if m % cand == 0:
            return cand, m
    tm = min(cap, 256)
    return tm, _round_up(m, tm)


def matmul_bias_act(x2d, w2d, b2d, *, slope=None, out_dtype=None,
                    tm_max=512, tn_max=256, tk_max=512):
    """out = act(x2d @ w2d + b2d); w2d/b2d already lane-padded at init."""
    m, k = x2d.shape
    k2, n = w2d.shape
    assert k == k2, (x2d.shape, w2d.shape)
    out_dtype = out_dtype or x2d.dtype

    if n % 128 == 0:                                     # pre-padded at init
        tn = min(tn_max, n)
        while n % tn:
            tn -= 128
    else:
        tn = n                                           # tiny unpadded case

    if k % 128 == 0:
        tk = min(tk_max, k)
        while k % tk:
            tk -= 128
    else:
        tk = k                                           # single K step, no pad

    tm, mp = _pick_m_tile(m, tm_max)

    # give the v7x megacore >= 2 parallel steps when it is cheap to do so
    if (mp // tm) * (n // tn) < 2:
        if n % 128 == 0 and n // 128 >= 2 and tn > 128:
            tn = 128
        elif tm >= 16 and tm % 16 == 0:
            tm //= 2

    x_in = x2d if mp == m else jnp.pad(x2d, ((0, mp - m), (0, 0)))

    out = pl.pallas_call(
        functools.partial(_matmul_bias_act_kernel, slope=slope),
        out_shape=jax.ShapeDtypeStruct((mp, n), out_dtype),
        grid_spec=pltpu.PrefetchScalarGridSpec(
            num_scalar_prefetch=0,
            grid=(mp // tm, n // tn, k // tk),
            in_specs=[pl.BlockSpec((tm, tk), lambda i, j, kk: (i, kk)),
                      pl.BlockSpec((tk, tn), lambda i, j, kk: (kk, j)),
                      pl.BlockSpec((1, tn), lambda i, j, kk: (0, j))],
            out_specs=pl.BlockSpec((tm, tn), lambda i, j, kk: (i, j)),
            scratch_shapes=[pltpu.VMEM((tm, tn), jnp.float32)]),
        compiler_params=pltpu.CompilerParams(
            dimension_semantics=("parallel", "parallel", "arbitrary"),
            vmem_limit_bytes=_VMEM_LIMIT),
    )(x_in, w2d, b2d)

    if mp != m:
        out = out[:m]
    return out


# ----------------------------------------------------------------------------
# Direct 3x3 conv: image DMA'd into a zero-haloed VMEM scratch (no HBM pad),
# output tiled over row blocks, small f32 VMEM accumulator, 9 tap matmuls.
# ----------------------------------------------------------------------------
def _direct_conv_kernel(x_hbm, w_ref, b_ref, o_ref, xpad_ref, acc_ref, sem,
                        *, k, pad, slope):
    i = pl.program_id(0)
    r = pl.program_id(1)
    j = pl.program_id(2)
    h, w_in, cin = x_hbm.shape[1], x_hbm.shape[2], x_hbm.shape[3]
    hp, wp = xpad_ref.shape[0], xpad_ref.shape[1]
    row_blk, wo, tn = o_ref.shape[1], o_ref.shape[2], o_ref.shape[3]

    # Copy this batch element's (un-padded) image straight into the zero-haloed
    # VMEM scratch once per image; the halo strips never overlap the DMA dest.
    @pl.when((r == 0) & (j == 0))
    def _():
        if pad > 0:
            zero_row = jnp.zeros((pad, wp, cin), xpad_ref.dtype)
            xpad_ref[0:pad, :, :] = zero_row
            xpad_ref[pad + h:hp, :, :] = zero_row
            zero_col = jnp.zeros((hp, pad, cin), xpad_ref.dtype)
            xpad_ref[:, 0:pad, :] = zero_col
            xpad_ref[:, pad + w_in:wp, :] = zero_col
            dst = xpad_ref.at[pl.ds(pad, h), pl.ds(pad, w_in), :]
        else:
            dst = xpad_ref
        cp = pltpu.make_async_copy(x_hbm.at[i], dst, sem)
        cp.start()
        cp.wait()

    row0 = r * row_blk
    acc_ref[...] = jnp.zeros_like(acc_ref)
    for dy in range(k):
        for dx in range(k):
            patch = xpad_ref[pl.ds(row0 + dy, row_blk), pl.ds(dx, wo), :]
            patch = patch.reshape(row_blk * wo, cin)
            wblk = w_ref[(dy * k + dx) * cin:(dy * k + dx + 1) * cin, :]
            acc_ref[...] += jnp.dot(patch, wblk,
                                    preferred_element_type=jnp.float32)

    acc = acc_ref[...] + b_ref[...]
    if slope is not None:
        acc = jnp.maximum(acc, slope * acc)
    # TODO(synk): fuse the following 2x2 avg-pool into this epilogue to save an
    # HBM round trip of the activation (kept standalone for lowering safety).
    o_ref[0] = acc.reshape(row_blk, wo, tn).astype(o_ref.dtype)


def _direct_conv_plan(h, w, cin, cout_p, k, pad, out_itemsize):
    hp, wp = h + 2 * pad, w + 2 * pad
    ho, wo = hp - k + 1, wp - k + 1
    if ho < 1 or wo < 1 or wo % 8 != 0 or cin % 8 != 0 or cout_p % 128 != 0:
        return None
    tn = 256 if cout_p % 256 == 0 else 128
    row_blk = 1
    for cand in range(ho, 0, -1):
        if ho % cand == 0 and cand * wo * tn * 4 <= (1 << 20):
            row_blk = cand
            break
    xpad_bytes = hp * wp * cin * 2
    w_bytes = 2 * k * k * cin * tn * 2
    out_bytes = 2 * row_blk * wo * tn * out_itemsize
    acc_bytes = row_blk * wo * tn * 4
    if xpad_bytes + w_bytes + out_bytes + acc_bytes + (1 << 20) > _DIRECT_CONV_BUDGET:
        return None
    return dict(hp=hp, wp=wp, ho=ho, wo=wo, tn=tn, row_blk=row_blk)


def _direct_conv(x, p, plan, *, slope, out_dtype):
    n, h, w, cin = x.shape
    k, pad = p["k"], p["padding"]
    cout_p = p["cout_p"]
    hp, wp, ho, wo = plan["hp"], plan["wp"], plan["ho"], plan["wo"]
    tn, row_blk = plan["tn"], plan["row_blk"]

    return pl.pallas_call(
        functools.partial(_direct_conv_kernel, k=k, pad=pad, slope=slope),
        out_shape=jax.ShapeDtypeStruct((n, ho, wo, cout_p), out_dtype),
        grid_spec=pltpu.PrefetchScalarGridSpec(
            num_scalar_prefetch=0,
            grid=(n, ho // row_blk, cout_p // tn),
            in_specs=[pl.BlockSpec(memory_space=pl.ANY),               # image stays in HBM
                      pl.BlockSpec((k * k * cin, tn), lambda i, r, j: (0, j)),
                      pl.BlockSpec((1, tn), lambda i, r, j: (0, j))],
            out_specs=pl.BlockSpec((1, row_blk, wo, tn),
                                   lambda i, r, j: (i, r, 0, j)),
            scratch_shapes=[pltpu.VMEM((hp, wp, cin), x.dtype),
                            pltpu.VMEM((row_blk * wo, tn), jnp.float32),
                            pltpu.SemaphoreType.DMA]),
        compiler_params=pltpu.CompilerParams(
            dimension_semantics=("parallel", "arbitrary", "arbitrary"),
            vmem_limit_bytes=_VMEM_LIMIT),
    )(x, p["w2d"], p["b"])


# ----------------------------------------------------------------------------
# 2x2 average pool (lane-aligned: channel count is a 128-multiple in the trunk)
# ----------------------------------------------------------------------------
def _avgpool_kernel(x_ref, o_ref, *, c):
    xv = x_ref[0].astype(jnp.float32)          # (th, 2, W2, 2C)
    rows = xv[:, 0] + xv[:, 1]                 # H-pair sum
    pooled = rows[:, :, :c] + rows[:, :, c:]   # W-pair sum (C % 128 == 0 -> vreg aligned)
    o_ref[0] = (0.25 * pooled).astype(o_ref.dtype)


def _avg_pool_xla(x):
    n, h, w, c = x.shape
    x = x[:, :(h // 2) * 2, :(w // 2) * 2, :]
    s = (x[:, 0::2, 0::2].astype(jnp.float32) + x[:, 0::2, 1::2].astype(jnp.float32)
         + x[:, 1::2, 0::2].astype(jnp.float32) + x[:, 1::2, 1::2].astype(jnp.float32))
    return (0.25 * s).astype(x.dtype)


def avg_pool2x2(x):
    """nn.AvgPool2d(kernel_size=2, stride=2) on NHWC input."""
    n, h, w, c = x.shape
    if h < 2 or w < 2 or h % 2 or w % 2 or c % 128 != 0:
        return _avg_pool_xla(x)                # e.g. the 3-channel RGB image
    h2, w2 = h // 2, w // 2
    xr = x.reshape(n, h2, 2, w2, 2 * c)        # free, contiguous reshape
    th = None
    for cand in (64, 32, 16, 8, 4, 2, 1):
        if h2 % cand == 0 and cand * 2 * w2 * 2 * c * x.dtype.itemsize <= (4 << 20):
            th = cand
            break
    if th is None:
        return _avg_pool_xla(x)
    try:
        return pl.pallas_call(
            functools.partial(_avgpool_kernel, c=c),
            out_shape=jax.ShapeDtypeStruct((n, h2, w2, c), x.dtype),
            grid=(n, h2 // th),
            in_specs=[pl.BlockSpec((1, th, 2, w2, 2 * c),
                                   lambda i, j: (i, j, 0, 0, 0))],
            out_specs=pl.BlockSpec((1, th, w2, c), lambda i, j: (i, j, 0, 0)),
            compiler_params=pltpu.CompilerParams(
                dimension_semantics=("parallel", "parallel"),
                vmem_limit_bytes=_VMEM_LIMIT),
        )(xr)
    except Exception:
        return _avg_pool_xla(x)  # TODO(synk): fallback if Mosaic rejects the 5-D block


# ----------------------------------------------------------------------------
# Fade-in: lane-dense (flattened to a multiple-of-128 last dim); alpha is a
# runtime SMEM scalar, so no recompile per alpha value.
# ----------------------------------------------------------------------------
def _fade_kernel(alpha_ref, d_ref, x_ref, o_ref):
    a = alpha_ref[0]
    d = d_ref[...].astype(jnp.float32)
    xv = x_ref[...].astype(jnp.float32)
    o_ref[...] = ((1.0 - a) * d + a * xv).astype(o_ref.dtype)


def _fade_xla(downscaled, x, alpha):
    a = jnp.asarray(alpha, jnp.float32)
    out = (1.0 - a) * downscaled.astype(jnp.float32) + a * x.astype(jnp.float32)
    return out.astype(x.dtype)


def fade_in(downscaled, x, alpha):
    """(1 - alpha) * downscaled + alpha * x."""
    shape = x.shape
    total = x.size
    width = None
    for cand in (512, 256, 128):
        if total % cand == 0:
            width = cand
            break
    if width is None:
        return _fade_xla(downscaled, x, alpha)
    rows = total // width
    tr = None
    if rows <= 2048:
        tr = rows
    else:
        for cand in range(2048, 7, -8):
            if rows % cand == 0:
                tr = cand
                break
    if tr is None:
        return _fade_xla(downscaled, x, alpha)

    d2 = downscaled.reshape(rows, width)
    x2 = x.reshape(rows, width)
    alpha_arr = jnp.asarray(alpha, dtype=jnp.float32).reshape(1)
    try:
        out = pl.pallas_call(
            _fade_kernel,
            out_shape=jax.ShapeDtypeStruct((rows, width), x.dtype),
            grid=(rows // tr,),
            in_specs=[pl.BlockSpec(memory_space=pltpu.MemorySpace.SMEM),
                      pl.BlockSpec((tr, width), lambda i: (i, 0)),
                      pl.BlockSpec((tr, width), lambda i: (i, 0))],
            out_specs=pl.BlockSpec((tr, width), lambda i: (i, 0)),
            compiler_params=pltpu.CompilerParams(
                dimension_semantics=("parallel",),
                vmem_limit_bytes=_VMEM_LIMIT),
        )(alpha_arr, d2, x2)
    except Exception:
        return _fade_xla(downscaled, x, alpha)  # TODO(synk): SMEM-scalar fallback
    return out.reshape(shape)


# ----------------------------------------------------------------------------
# Conv / linear wrappers (equalized-lr scale + lane padding folded at init)
# ----------------------------------------------------------------------------
def _extract_patches(x, k, stride, padding):
    n, h, w, c = x.shape
    if padding:
        x = jnp.pad(x, ((0, 0), (padding, padding), (padding, padding), (0, 0)))
    hp, wp = x.shape[1], x.shape[2]
    ho = (hp - k) // stride + 1
    wo = (wp - k) // stride + 1
    cols = []
    for dy in range(k):
        for dx in range(k):
            cols.append(x[:, dy:dy + stride * ho:stride,
                          dx:dx + stride * wo:stride, :])
    patches = jnp.stack(cols, axis=3)                 # (N, Ho, Wo, k*k, C)
    return patches.reshape(n, ho, wo, k * k * c), ho, wo


def equalized_conv(p, x, slope=None, out_dtype=None):
    """EqualizedConv forward (sqrt(2/fan_in) folded into pre-padded p['w2d'])."""
    k, stride, padding = p["k"], p["stride"], p["padding"]
    out_dtype = out_dtype or x.dtype
    n, h, w, cin_in = x.shape                         # cin_in == p["cin_p"]

    if k == 1 and stride == 1 and padding == 0:       # 1x1 conv == matmul
        out = matmul_bias_act(x.reshape(n * h * w, cin_in), p["w2d"], p["b"],
                              slope=slope, out_dtype=out_dtype)
        return out.reshape(n, h, w, p["cout_p"])

    if stride == 1:
        plan = _direct_conv_plan(h, w, cin_in, p["cout_p"], k, padding,
                                 jnp.dtype(out_dtype).itemsize)
        if plan is not None:
            try:
                return _direct_conv(x, p, plan, slope=slope, out_dtype=out_dtype)
            except Exception:
                pass  # TODO(synk): fall back to im2col if the manual-DMA path is rejected

    # im2col fallback -- only hit for tiny maps (final 4x4 block) / odd shapes.
    patches, ho, wo = _extract_patches(x, k, stride, padding)
    out = matmul_bias_act(patches.reshape(n * ho * wo, k * k * cin_in),
                          p["w2d"], p["b"], slope=slope, out_dtype=out_dtype)
    return out.reshape(n, ho, wo, p["cout_p"])


def equalized_linear(p, x, slope=None, out_dtype=None):
    return matmul_bias_act(x, p["w2d"], p["b"], slope=slope,
                           out_dtype=out_dtype or x.dtype)


def disc_cell(p, x):
    """DiscriminatorCell: conv3x3 + LeakyReLU(0.2), conv3x3 + LeakyReLU(0.2)."""
    x = equalized_conv(p["conv1"], x, slope=LEAKY_SLOPE)
    x = equalized_conv(p["conv2"], x, slope=LEAKY_SLOPE)
    return x


def final_block(p, x):
    """FinalDiscriminatorBlock: minibatch-stddev + conv3x3 + conv4x4 + MLP."""
    n, h, w, _ = x.shape
    c = p["c_in"]
    x = x[..., :c]                                    # strip channel padding (tiny at 4x4)
    xf = x.astype(jnp.float32)
    # Minibatch-stddev scalar: tiny cross-batch reduction -> plain XLA.
    stat = jnp.mean(jnp.std(xf.reshape(n, -1), axis=0, ddof=1))
    stat_map = jnp.full((n, h, w, 1), stat, dtype=jnp.float32)
    xcat = jnp.concatenate([xf, stat_map], axis=-1).astype(COMPUTE_DTYPE)
    x = equalized_conv(p["conv1"], xcat, slope=LEAKY_SLOPE)   # 3x3, same
    x = equalized_conv(p["conv2"], x, slope=LEAKY_SLOPE)      # 4x4, valid -> 1x1
    x = x.reshape(n, -1)
    x = equalized_linear(p["fc1"], x, slope=LEAKY_SLOPE)
    x = equalized_linear(p["fc2"], x, slope=None, out_dtype=jnp.float32)
    return x[:, :1]


# ----------------------------------------------------------------------------
# Parameter init: w ~ N(0,1), b = 0; equalized-lr scale + lane padding folded
# in once (bf16 weights, f32 bias).  Channel padding flows through the trunk.
# ----------------------------------------------------------------------------
def _init_conv(key, cin, cout, k, stride, padding, cin_padded=None):
    cin_p = _round_up(cin, 128) if cin_padded is None else cin_padded
    cout_p = _round_up(cout, 128)
    w = jax.random.normal(key, (k, k, cin, cout), dtype=jnp.float32)
    w = w * math.sqrt(2.0 / (cin * k * k))
    w = jnp.pad(w, ((0, 0), (0, 0), (0, cin_p - cin), (0, cout_p - cout)))
    w2d = w.reshape(k * k * cin_p, cout_p).astype(COMPUTE_DTYPE)
    return {"w2d": w2d, "b": jnp.zeros((1, cout_p), jnp.float32),
            "k": k, "stride": stride, "padding": padding,
            "cin": cin, "cin_p": cin_p, "cout": cout, "cout_p": cout_p}


def _init_linear(key, fin, fout, fin_padded=None):
    fin_p = _round_up(fin, 128) if fin_padded is None else fin_padded
    fout_p = _round_up(fout, 128)
    w = jax.random.normal(key, (fin, fout), dtype=jnp.float32) * math.sqrt(2.0 / fin)
    w = jnp.pad(w, ((0, fin_p - fin), (0, fout_p - fout)))
    return {"w2d": w.astype(COMPUTE_DTYPE), "b": jnp.zeros((1, fout_p), jnp.float32),
            "cin": fin, "cin_p": fin_p, "cout": fout, "cout_p": fout_p}


def init_discriminator(key, input_channels, output_channels, w_dim, img_channels=3):
    depth = len(input_channels)
    keys = iter(jax.random.split(key, 4 * depth + 8))
    from_rgb, blocks = [], []
    for i in range(depth):
        from_rgb.append(_init_conv(next(keys), img_channels, input_channels[i],
                                   1, 1, 0, cin_padded=img_channels))
        blocks.append({
            "conv1": _init_conv(next(keys), input_channels[i], output_channels[i], 3, 1, 1),
            "conv2": _init_conv(next(keys), output_channels[i], output_channels[i], 3, 1, 1),
        })
    c = output_channels[-1]
    final = {
        "c_in": c,
        "conv1": _init_conv(next(keys), c + 1, c, 3, 1, 1, cin_padded=c + 1),
        "conv2": _init_conv(next(keys), c, c, 4, 1, 0),
        "fc1": _init_linear(next(keys), c, w_dim),
        "fc2": _init_linear(next(keys), w_dim, 1),
    }
    return {"from_rgb": from_rgb, "disc_blocks": blocks, "final": final, "depth": depth}


# ----------------------------------------------------------------------------
# Forward pass (mirrors Discriminator.forward; `steps` must be a static int)
# ----------------------------------------------------------------------------
def discriminator_forward(params, x_nchw, steps, alpha):
    x_img = jnp.transpose(x_nchw, (0, 2, 3, 1)).astype(COMPUTE_DTYPE)   # NCHW -> NHWC
    depth = params["depth"]
    pos = depth - steps
    # TODO(synk): no LeakyReLU after fromRGB (EqualizedConv definition not provided).
    x = equalized_conv(params["from_rgb"][pos], x_img)
    if steps > 1:
        down_block = avg_pool2x2(x_img)
        down_from_rgb = equalized_conv(params["from_rgb"][pos + 1], down_block)
        x = disc_cell(params["disc_blocks"][pos], x)
        down = avg_pool2x2(x)
        x = fade_in(down_from_rgb, down, alpha)
    for i in range(pos + 1, depth - 1):
        x = disc_cell(params["disc_blocks"][i], x)
        x = avg_pool2x2(x)
    x = disc_cell(params["disc_blocks"][depth - 1], x)
    x = final_block(params["final"], x)
    return x


# ----------------------------------------------------------------------------
if __name__ == "__main__":
    key = jax.random.PRNGKey(0)
    k_param, k_x = jax.random.split(key)

    input_channels = [8, 16]
    output_channels = [16, 16]
    w_dim = 8
    img_channels = 3

    params = init_discriminator(k_param, input_channels, output_channels,
                                w_dim, img_channels)

    # depth = 2, steps = 2 -> input resolution 8x8 (final block reduces 4x4 -> 1x1)
    x = jax.random.normal(k_x, (2, img_channels, 8, 8), dtype=jnp.float32)   # NCHW
    steps, alpha = 2, 0.5

    out = discriminator_forward(params, x, steps, alpha)
    out = jax.block_until_ready(out)
    assert out.shape == (2, 1), out.shape
    assert bool(jnp.all(jnp.isfinite(out))), out
    print("KERNEL_OK")
</pallas_src>

<mosaic_0001>
module attributes {stable_mosaic.version = 11 : i64} {
  func.func @_matmul_bias_act_kernel(%arg0: i32, %arg1: i32, %arg2: i32, %arg3: memref<64x3xbf16, #tpu.memory_space<vmem>>, %arg4: memref<3x128xbf16, #tpu.memory_space<vmem>>, %arg5: memref<1x128xf32, #tpu.memory_space<vmem>>, %arg6: memref<64x128xbf16, #tpu.memory_space<vmem>>, %arg7: memref<64x128xf32, #tpu.memory_space<vmem>>) attributes {dimension_semantics = [#tpu.dimension_semantics<parallel>, #tpu.dimension_semantics<parallel>, #tpu.dimension_semantics<arbitrary>], iteration_bounds = array<i64: 2, 1, 1>, scalar_prefetch = 0 : i64, scratch_operands = 1 : i64, tpu.core_type = #tpu.core_type<tc>, window_params = [{transform_indices = @transform_0, window_bounds = array<i64: 64, 3>}, {transform_indices = @transform_1, window_bounds = array<i64: 3, 128>}, {transform_indices = @transform_2, window_bounds = array<i64: 1, 128>}, {transform_indices = @transform_3, window_bounds = array<i64: 64, 128>}]} {
    %c0_i32 = arith.constant 0 : i32
    %0 = arith.cmpi eq, %arg2, %c0_i32 : i32
    %1 = arith.extui %0 : i1 to i32
    %c0_i32_0 = arith.constant 0 : i32
    %2 = arith.cmpi ne, %1, %c0_i32_0 : i32
    scf.if %2 {
      %cst_10 = arith.constant 0.000000e+00 : f32
      %12 = vector.broadcast %cst_10 : f32 to vector<64x128xf32>
      %c0_11 = arith.constant 0 : index
      %c0_12 = arith.constant 0 : index
      %13 = vector.load %arg7[%c0_11, %c0_12] : memref<64x128xf32, #tpu.memory_space<vmem>>, vector<64x128xf32>
      tpu.vector_store %arg7[%c0_11, %c0_12], %12 {strides = array<i32>} : memref<64x128xf32, #tpu.memory_space<vmem>>, vector<64x128xf32>,
    } else {
    }
    %c0 = arith.constant 0 : index
    %c0_1 = arith.constant 0 : index
    %3 = vector.load %arg7[%c0, %c0_1] : memref<64x128xf32, #tpu.memory_space<vmem>>, vector<64x128xf32>
    %c0_2 = arith.constant 0 : index
    %c0_3 = arith.constant 0 : index
    %4 = vector.load %arg3[%c0_2, %c0_3] : memref<64x3xbf16, #tpu.memory_space<vmem>>, vector<64x3xbf16>
    %c0_4 = arith.constant 0 : index
    %c0_5 = arith.constant 0 : index
    %5 = vector.load %arg4[%c0_4, %c0_5] : memref<3x128xbf16, #tpu.memory_space<vmem>>, vector<3x128xbf16>
    %cst = arith.constant dense<0.000000e+00> : vector<64x128xf32>
    %6 = tpu.matmul %4, %5, %cst {dimension_numbers = #tpu.dot_dimension_numbers<[1], [0], [0], [1], [0, 0, 1, 1], [], []>} : vector<64x3xbf16>, vector<3x128xbf16>, vector<64x128xf32> -> vector<64x128xf32>
    %7 = arith.addf %3, %6 : vector<64x128xf32>
    %c0_6 = arith.constant 0 : index
    %c0_7 = arith.constant 0 : index
    %8 = vector.load %arg7[%c0_6, %c0_7] : memref<64x128xf32, #tpu.memory_space<vmem>>, vector<64x128xf32>
    tpu.vector_store %arg7[%c0_6, %c0_7], %7 {strides = array<i32>} : memref<64x128xf32, #tpu.memory_space<vmem>>, vector<64x128xf32>,
    %c0_i32_8 = arith.constant 0 : i32
    %9 = arith.cmpi eq, %arg2, %c0_i32_8 : i32
    %10 = arith.extui %9 : i1 to i32
    %c0_i32_9 = arith.constant 0 : i32
    %11 = arith.cmpi ne, %10, %c0_i32_9 : i32
    scf.if %11 {
      %c0_10 = arith.constant 0 : index
      %c0_11 = arith.constant 0 : index
      %12 = vector.load %arg7[%c0_10, %c0_11] : memref<64x128xf32, #tpu.memory_space<vmem>>, vector<64x128xf32>
      %c0_12 = arith.constant 0 : index
      %c0_13 = arith.constant 0 : index
      %13 = vector.load %arg5[%c0_12, %c0_13] : memref<1x128xf32, #tpu.memory_space<vmem>>, vector<1x128xf32>
      %14 = vector.broadcast %13 : vector<1x128xf32> to vector<64x128xf32>
      %15 = arith.addf %12, %14 : vector<64x128xf32>
      %16 = arith.truncf %15 : vector<64x128xf32> to vector<64x128xbf16>
      %c0_14 = arith.constant 0 : index
      %c0_15 = arith.constant 0 : index
      %17 = vector.load %arg6[%c0_14, %c0_15] : memref<64x128xbf16, #tpu.memory_space<vmem>>, vector<64x128xbf16>
      tpu.vector_store %arg6[%c0_14, %c0_15], %16 {strides = array<i32>} : memref<64x128xbf16, #tpu.memory_space<vmem>>, vector<64x128xbf16>,
    } else {
    }
    return
  }
  func.func @transform_0(%arg0: i32, %arg1: i32, %arg2: i32) -> (i32, i32) {
    %c0_i32 = arith.constant 0 : i32
    return %arg0, %arg2 : i32, i32
  }
  func.func @transform_1(%arg0: i32, %arg1: i32, %arg2: i32) -> (i32, i32) {
    %c0_i32 = arith.constant 0 : i32
    return %arg2, %arg1 : i32, i32
  }
  func.func @transform_2(%arg0: i32, %arg1: i32, %arg2: i32) -> (i32, i32) {
    %c0_i32 = arith.constant 0 : i32
    %c0_i32_0 = arith.constant 0 : i32
    return %c0_i32, %arg1 : i32, i32
  }
  func.func @transform_3(%arg0: i32, %arg1: i32, %arg2: i32) -> (i32, i32) {
    %c0_i32 = arith.constant 0 : i32
    return %arg0, %arg1 : i32, i32
  }
}

</mosaic_0001>

<bundles_post_ra>
// kernel: tpu_custom_call.1
= control target key start
LH: loop header
LB: loop body
LE: loop exit
PB: predicated region body
PF: predicated region fallthrough
CT: control target
= control target key end

     0   :  { %8 = vsyncpa [#allocation4], 0  ;;  %s957_s0 = inlined_call_operand.vmem [shape: bf16[128,3], index: 0, kind: input, shape index: {}]   ;;  %s958_s1 = inlined_call_operand.vmem [shape: bf16[3,128], index: 1, kind: input, shape index: {}]   ;;  %s959_s2 = inlined_call_operand.vmem [shape: f32[1,128], index: 2, kind: input, shape index: {}]   ;;  %s960_s3 = inlined_call_operand.hbm [shape: bf16[128,128], index: 3, kind: output, shape index: {}]  }
   0x1   :  { %10 = vsyncpa [#allocation4 + $0x1], 0  ;;  %s833_s12 = smov 0   ;;  %s835_s13 = smov 0  }
   0x2   :  { %s837_s14 = smov 0   ;;  %s839_s15 = smov 0  }
   0x3   :  { %s841_s16 = smov 0   ;;  %s843_s17 = smov 0  }
   0x4 LB: > { %s586_s18 = sadd.s32 4294967295, %s807_s17   ;;  %s587_s19 = sadd.s32 4294967294, %s807_s17   ;;  %s807_s17 = sphi %s843_s17, %s16_s17   ;;  %s803_s16 = sphi %s841_s16, %s967_s16   ;;  %s799_s15 = sphi %s839_s15, %s966_s15   ;;  %s795_s14 = sphi %s837_s14, %s965_s14   ;;  %s791_s13 = sphi %s835_s13, %s964_s13   ;;  %s787_s12 = sphi %s833_s12, %s963_s12  }
   0x5   : > { %s35_s20 = sadd.s32 1, %s803_s16  ;;  %s126_s21 = sadd.s32 1, %s795_s14 }
   0x6   : > { %p37_p0 = scmp.ge.s32.totalorder %s35_s20, 2  ;;  %p136_p1 = scmp.ne.s32.totalorder %s795_s14, %s791_s13 }
   0x7   : > { %p137_p2 = scmp.eq.s32.totalorder %s586_s18, 1  ;;  %p142_p3 = scmp.ne.s32.totalorder %s791_s13, %s787_s12 }
   0x8   : > { %s969_s20 = smov (%p37_p0, %s35_s20), 0  ;;  %p143_p5 = scmp.eq.s32.totalorder %s587_s19, 1 }
   0x9   : > { %p873_p4 = por %p137_p2, %p136_p1  ;;  %s121_s23 = ssub.s32 %s803_s16, %s969_s20 }
   0xa   : > { %p592_p6 = scmp.ge.s32.totalorder %s807_s17, 1  ;;  %p124_p7 = scmp.eq.s32.totalorder %s121_s23, 0 }
   0xb   : > { %p880_p8 = por %p143_p5, %p142_p3  ;;  %p189_p9 = scmp.lt.s32.totalorder %s807_s17, 3 }
   0xc   : > { %s886_s25 = scalar_select %p124_p7, %s795_s14, %s126_s21  }
   0xd   : > { %p190_p10 = pnand %p592_p6, %p189_p9 }
   0xe   : > { %v275_v0 = vld [vmem:[%s958_s1] sm:$0x3] (!%p190_p10)  ;;  %vm309_vm0 = vcmask (!%p190_p10), 1040384   ;;  %vm310_vm1 = vcmask (!%p190_p10), 1041408   ;;  %s594_s28 = sshll.u32 (!%p190_p10), %s799_s15, 3  ;;  %v809_v1 = vmov (!%p190_p10), 65535  }
   0xf   : > { %193 = sbr.rel (%p190_p10) target bundleno = 261 (0x105), region = 32  ;;  %v311_v2 = vsel (!%p190_p10), %vm309_vm0, 4294967295, %v809_v1  ;;  %p227_p11 = scmp.lt.s32.totalorder (!%p190_p10), %s594_s28, 15  ;;  %vm296_vm2 = vcmask (!%p190_p10), 23552   ;;  %v604_v10 = vld [vmem:[%s959_s2] ss:$0 sm:$0xff] (!%p190_p10) }
  0x10   : > { %v312_v3 = vsel (!%p190_p10), %vm310_vm1, %v311_v2, 0  ;;  %s223_s6 = sand.u32 (!%p190_p10), 1, %s791_s13   ;;  %s626_s18 = sshll.u32 (!%p190_p10), %s799_s15, 9 }
  0x11   : > { %v314_v4 = vand.u32 (!%p190_p10), %v312_v3, %v275_v0  ;;  %s593_s7 = sshll.u32 (!%p190_p10), %s223_s6, 5  ;;  %s907_s15 = scalar_lea.hbm (!%p190_p10), %s960_s3, %s626_s18 }
  0x12   : > { %s225_s10 = scalar_lea.vmem (!%p190_p10), [#allocation3], %s593_s7  ;;  %s911_s23 = scalar_lea.sflag (!%p190_p10), [#allocation4], %s223_s6 }
  0x13   : > { %655 = vmatprep.subr.bf16.mxu0 (!%p190_p10), %v314_v4  ;;  %665 = vmatprep.subr.bf16.mxu1 (!%p190_p10), %v314_v4  ;;  %s478_s11 = sshll.u32 (!%p190_p10), %s225_s10, 4  ;;  %s810_s27 = smov (!%p190_p10), [#allocation3]   ;;  %s902_s11 = int_to_ptr.vmem [resolvable:$true] %s478_s11 }
  0x14   : > { %656 = vmatpush3.bf16.msra.mxu0 (!%p190_p10), %v314_v4  ;;  %666 = vmatpush3.bf16.msra.mxu1 (!%p190_p10), %v314_v4  ;;  %s729_s26 = scalar_lea.vmem (!%p190_p10), %s902_s11, 512 }
  0x15   : > { %p730_p12 = scmp.ne.s32.totalorder (!%p190_p10), %s902_s11, %s729_s26 }
  0x16   : > { %s971_s28 = smov (!%p227_p11, %s594_s28), 15 }
  0x17   : > { %s595_s29 = sshll.u32 %s971_s28, 2  ;;  %p731_p13 = pnand %p730_p12, %p873_p4 }
  0x18   : > { %s233_s5 = scalar_lea.vmem %s957_s0, %s595_s29  ;;  %s733_s28 = sshll.u32 %s810_s27, 4  ;;  %s734_s28 = int_to_ptr.vmem [resolvable:$false] %s733_s28 }
  0x19   : > { %v725_v5 = vld [vmem:[%s233_s5] sm:$0xff]   ;;  %v726_v6 = vld [vmem:[%s233_s5 + $0x10] sm:$0xff]   ;;  %v727_v7 = vld [vmem:[%s233_s5 + $0x8] sm:$0xff]   ;;  %p732_p0 = pneg %p731_p13  ;;  %s735_s29 = scalar_lea.vmem %s734_s28, 1024 }
  0x1a   : > { %657 = vmatprep.mubr.msk.bf16.mxu0 %vm296_vm2, %v725_v5  ;;  %661 = vmatprep.mubr.msk.bf16.mxu1 %vm296_vm2, %v726_v6  ;;  %v728_v8 = vld [vmem:[%s233_s5 + $0x18] sm:$0xff]   ;;  %p736_p1 = scmp.lt.s32.totalorder %s902_s11, %s734_s28  ;;  %p737_p2 = scmp.lt.s32.totalorder %s735_s29, %s729_s26 }
  0x1b   : > { %658 = vmatmul.mubr.msk.bf16.vlgmr.msra.gmra.mrb[0].mxu0 %vm296_vm2, %v727_v7  ;;  %662 = vmatmul.mubr.msk.bf16.vlgmr.msra.gmra.mrb[0].mxu1 %vm296_vm2, %v728_v8 }
  0x1c   : > { %p738_p3 = por %p737_p2, %p736_p1 }
  0x1e   : > { %p739_p5 = pnand %p738_p3, %p732_p0 }
  0xee   : > { %v659_v9 = vpop.f32.mrb[0].mxu0  ;;  %v663_v11 = vpop.f32.mrb[0].mxu1 }
  0xef   : > { %v350_v12 = vpop.f32.mrb[1].mxu0  ;;  %v366_v13 = vpop.f32.mrb[1].mxu1  ;;  %v417_v15 = vadd.f32 %v659_v9, %v604_v10  ;;  %v421_v19 = vadd.f32 %v663_v11, %v604_v10 }
  0xf0   : > { %v660_v14 = vpop.f32.mrb[2].mxu0  ;;  %v664_v17 = vpop.f32.mrb[2].mxu1  ;;  %v415_v20 = vadd.f32 %v604_v10, %v350_v12  ;;  %v419_v24 = vadd.f32 %v604_v10, %v366_v13 }
  0xf1   : > { %v418_v16 = vadd.f32 %v660_v14, %v604_v10  ;;  %v353_v18 = vpop.f32.mrb[3].mxu0  ;;  %v422_v21 = vadd.f32 %v664_v17, %v604_v10  ;;  %v369_v23 = vpop.f32.mrb[3].mxu1 }
  0xf2   : > { %v416_v22 = vadd.f32 %v604_v10, %v353_v18  ;;  %v420_v26 = vadd.f32 %v604_v10, %v369_v23 }
  0xf3   : > { %v635_v25 = vpack.c.bf16 %v418_v16, %v417_v15  ;;  %v645_v27 = vpack.c.bf16 %v422_v21, %v421_v19 }
  0xf4   : > { %v630_v28 = vpack.c.bf16 %v416_v22, %v415_v20  ;;  %v640_v29 = vpack.c.bf16 %v420_v26, %v419_v24 }
  0xf5   : > { %647 = vst [vmem:[%s225_s10 + $0x8] sm:$0xff] %v635_v25   ;;  %649 = vst [vmem:[%s225_s10 + $0x18] sm:$0xff] %v645_v27  }
  0xf6   : > { %631 = vst [vmem:[%s225_s10] sm:$0xff] %v630_v28   ;;  %648 = vst [vmem:[%s225_s10 + $0x10] sm:$0xff] %v640_v29  }
  0xf7   : > { %742 = shalt.err (!%p739_p5)
}
  0xf8   : > { %s743_s30 = scalar_lea.hbm %s907_s15, 512  ;;  %s747_s6 = scalar_lea.hbm %s960_s3, 1024 }
  0xf9   : > { %p744_p6 = scmp.ne.s32.totalorder %s907_s15, %s743_s30  ;;  %p748_p10 = scmp.lt.u32.totalorder %s907_s15, %s960_s3 }
  0xfa   : > { %p749_p11 = scmp.lt.u32.totalorder %s747_s6, %s743_s30  ;;  %p751_p13 = scmp.lt.u32.totalorder %s743_s30, %s907_s15 }
  0xfb   : > { %p745_p7 = pnand %p744_p6, %p873_p4 }
  0xfc   : > { %p750_p12 = por %p749_p11, %p748_p10 }
  0xfd   : > { %p746_p9 = pneg %p745_p7 }
  0xfe   : > { %p752_p0 = por %p751_p13, %p750_p12 }
 0x100   : > { %p753_p1 = pnand %p752_p0, %p746_p9 }
 0x102   : > { %756 = shalt.err (!%p753_p1)
}
 0x103   : > { %s811_s9 = smov 64   ;;  %s812_s10 = smov 4  }
 0x104   : > { %667 = dma.vmem_to_hbm [thread:$0]  (%p873_p4), %s902_s11, 512, %s907_s15, %s911_s23, %s811_s9, %s811_s9, %s812_s10  }
 0x105 PF: > { %p673_p2 = scmp.ge.s32.totalorder %s807_s17, 2  ;;  %s493_s18 = sand.u32 1, %s787_s12  }
 0x106   : > { %s494_s19 = scalar_lea.sflag [#allocation4], %s493_s18 }
 0x107   : > { %p670_p3 = pnand %p673_p2, %p880_p8 }
 0x109   : > { %782 = dma.done.wait (!%p670_p3), %s494_s19, 512  }
 0x10a   : > { %784 = vsyncadd (!%p670_p3), %s494_s19, 4294966784  ;;  %s16_s17 = sadd.s32 1, %s807_s17   ;;  %s963_s12 = smov %s791_s13 }
 0x10b   : > { %p13_p5 = scmp.ge.s32.totalorder %s16_s17, 4   ;;  %s964_s13 = smov %s795_s14 }
 0x10c   : > { %s965_s14 = smov %s886_s25  ;;  %s966_s15 = smov %s803_s16 }
 0x10d   : > { %s967_s16 = smov %s969_s20  ;;  %15 = sbr.rel (!%p13_p5) target bundleno = 4 (0x4), region = 81 }
 0x114   :  { %499 = vsyncpa [#allocation4], 1 }
 0x115   :  { %501 = vsyncpa [#allocation4 + $0x1], 1 }

</bundles_post_ra>
